<compile_context>
chip_gen: v7x
topology: tpu7x:2x2x1
jax: 0.10.0
libtpu: 0.0.40
codegen_flags: <defaults>
</compile_context>

<pallas_src>
import functools
import math

import jax
import jax.numpy as jnp
from jax.experimental import pallas as pl
from jax.experimental.pallas import tpu as pltpu


_NEG_BIG = -1e30  # additive softmax mask for non-edges (softmax math stays in f32)


def _round_up(x, m):
    return ((x + m - 1) // m) * m


def _device_config():
    """(max_row_tile, vmem_limit_bytes) tuned per TPU generation."""
    vmem_bytes = 64 * 1024 * 1024
    try:
        info = pltpu.get_tpu_info()
        vmem_bytes = int(getattr(info, "vmem_capacity_bytes", vmem_bytes))
    except Exception:
        pass
    if vmem_bytes >= 100 * 1024 * 1024:           # v5e / v6e: 128 MiB VMEM, single TC
        return 512, 64 * 1024 * 1024
    return 256, 32 * 1024 * 1024                  # v7x: 64 MiB VMEM per TC, 2 TCs


def _choose_row_tile(n, max_tile, vmem_limit):
    """Row tile and padded node count (tile divides n_pad; tile sized to fit VMEM)."""
    n8 = _round_up(n, 8)
    if n8 <= max_tile:
        return n8, n8                             # single full-extent tile
    # rough pass-2 VMEM per target row: mask (int8, double-buffered) + bias scratch +
    # two [tile, N] f32 score temporaries.
    per_row = 20 * n8 + 1024
    cap = max(32, int((vmem_limit * 0.6) // per_row))
    tile = min(max_tile, cap)
    tile -= tile % 32                             # int8 mask sublane packing (32,128)
    tile = max(tile, 32)
    return tile, _round_up(n, tile)


# ---------------------------------------------------------------------------
# Pass 1: fused projection  [h | e] = x @ [W_all | W_e]
# ---------------------------------------------------------------------------
def _project_kernel(x_ref, w_ref, h_ref, e_ref):
    # x: [TM, Fin] bf16    w: [Fin, H*Fp + 128] bf16
    acc = jnp.dot(x_ref[...], w_ref[...], preferred_element_type=jnp.float32)
    hf = h_ref.shape[-1]                          # lane-aligned split (multiple of 128)
    h_ref[...] = acc[:, :hf].astype(h_ref.dtype)  # bf16 writeback (MXU RHS in pass 2)
    e_ref[...] = acc[:, hf:]                      # f32 attention logits


# ---------------------------------------------------------------------------
# Pass 2: masked multi-head attention over one tile of target rows
# ---------------------------------------------------------------------------
def _attention_kernel(edst_ref, esrc_ref, mask_ref, h_ref, b_ref, out_ref, bias_scr,
                      *, activation):
    num_heads = esrc_ref.shape[0]

    # Expand the compact int8 edge mask into an additive softmax bias once per tile
    # (0 where edge j->i exists, -1e30 otherwise); reused by every head.
    bias_scr[...] = (1.0 - mask_ref[...].astype(jnp.float32)) * _NEG_BIG

    head_out = []
    for hd in range(num_heads):                   # H is small and static
        e_d = edst_ref[:, hd:hd + 1]              # [TN, 1]
        e_s = esrc_ref[hd:hd + 1, :]              # [1, Np]
        s = e_d + e_s                             # [TN, Np]
        s = jnp.maximum(s, 0.2 * s)               # LeakyReLU(0.2): mul + max
        s = s + bias_scr[...]                     # mask non-edges / padded sources
        m = jnp.max(s, axis=-1, keepdims=True)
        p = jnp.exp(s - m)                        # masked entries underflow to 0
        denom = jnp.sum(p, axis=-1, keepdims=True)
        o = jnp.dot(p.astype(jnp.bfloat16), h_ref[hd],
                    preferred_element_type=jnp.float32)      # [TN, Fp]
        # deferred normalization: scale the [TN, Fp] result, not the [TN, Np] probs
        head_out.append(o * pl.reciprocal(denom, approx=True))

    out = head_out[0] if num_heads == 1 else jnp.concatenate(head_out, axis=-1)
    out = out + b_ref[...]                        # lane-dense [TN, H*Fp]

    if activation == "elu":
        out = jnp.where(out > 0, out, jnp.expm1(jnp.minimum(out, 0.0)))
    elif activation == "sigmoid":
        out = jax.nn.sigmoid(out)

    out_ref[...] = out.astype(out_ref.dtype)


def gat_conv(x, adj_mask, w, a_src, a_dst, bias, *, activation, out_dtype,
             row_tile, vmem_limit):
    """One multi-head GATConv layer (inference) on padded node arrays.

    x:        [Np, Fin]       node features (rows >= N are zero padding)
    adj_mask: [Np, Np] int8   1 if edge j->i (incl. self loops on real nodes) else 0
    w:        [H, Fin, Fout]
    a_src:    [H, Fout]
    a_dst:    [H, Fout]
    bias:     [H, Fout]
    returns   ([Np, H*Fp], Fp) with per-head output padded from Fout to Fp lanes
    """
    n_pad, f_in = x.shape
    n_heads, _, f_out = w.shape
    assert n_pad % row_tile == 0

    # Pad per-head width so heads * f_pad is a lane-dense multiple of 128.
    f_unit = 128 // math.gcd(n_heads, 128)
    f_pad = _round_up(f_out, f_unit)
    hf_pad = n_heads * f_pad
    e_pad = _round_up(2 * n_heads, 128)

    # Per-head feature weights (padded) + folded attention-logit weights.
    w_feat = jnp.zeros((n_heads, f_in, f_pad), jnp.float32).at[:, :, :f_out].set(w)
    w_feat = jnp.transpose(w_feat, (1, 0, 2)).reshape(f_in, hf_pad)
    w_att = jnp.concatenate([jnp.einsum("hif,hf->ih", w, a_dst),
                             jnp.einsum("hif,hf->ih", w, a_src)], axis=1)   # [Fin, 2H]
    w_att = jnp.zeros((f_in, e_pad), jnp.float32).at[:, :2 * n_heads].set(w_att)
    w_big = jnp.concatenate([w_feat, w_att], axis=1).astype(jnp.bfloat16)

    b_flat = jnp.zeros((n_heads, f_pad), jnp.float32).at[:, :f_out].set(bias)
    b_flat = b_flat.reshape(1, hf_pad)

    cparams = pltpu.CompilerParams(
        dimension_semantics=("parallel",),         # row tiles independent -> megacore on v7x
        vmem_limit_bytes=vmem_limit)

    grid = (n_pad // row_tile,)

    # ---- pass 1: fused projection + attention logits -----------------------
    h_all, e_all = pl.pallas_call(
        _project_kernel,
        out_shape=(jax.ShapeDtypeStruct((n_pad, hf_pad), jnp.bfloat16),
                   jax.ShapeDtypeStruct((n_pad, e_pad), jnp.float32)),
        grid_spec=pltpu.PrefetchScalarGridSpec(
            num_scalar_prefetch=0, grid=grid,
            in_specs=[
                pl.BlockSpec((row_tile, f_in), lambda i: (i, 0)),            # x row tile
                pl.BlockSpec((f_in, hf_pad + e_pad), lambda i: (0, 0)),      # fused weights
            ],
            out_specs=(pl.BlockSpec((row_tile, hf_pad), lambda i: (i, 0)),   # h (bf16)
                       pl.BlockSpec((row_tile, e_pad), lambda i: (i, 0)))),  # e (f32)
        compiler_params=cparams,
    )(x.astype(jnp.bfloat16), w_big)

    # tiny one-shot layout plumbing outside the kernels (bf16 / [N, H]-sized)
    e_dst = e_all[:, :n_heads]                                               # [Np, H]
    e_src_t = jnp.transpose(e_all[:, n_heads:2 * n_heads])                   # [H, Np]
    h_heads = jnp.transpose(h_all.reshape(n_pad, n_heads, f_pad), (1, 0, 2)) # [H, Np, Fp]

    # ---- pass 2: masked softmax attention, tiled over target rows ----------
    kernel = functools.partial(_attention_kernel, activation=activation)
    out = pl.pallas_call(
        kernel,
        out_shape=jax.ShapeDtypeStruct((n_pad, hf_pad), out_dtype),
        grid_spec=pltpu.PrefetchScalarGridSpec(
            num_scalar_prefetch=0, grid=grid,
            in_specs=[
                pl.BlockSpec((row_tile, n_heads), lambda i: (i, 0)),         # e_dst rows
                pl.BlockSpec((n_heads, n_pad), lambda i: (0, 0)),            # e_src (resident)
                pl.BlockSpec((row_tile, n_pad), lambda i: (i, 0)),           # int8 mask rows
                pl.BlockSpec((n_heads, n_pad, f_pad), lambda i: (0, 0, 0)),  # per-head h
                pl.BlockSpec((1, hf_pad), lambda i: (0, 0)),                 # layer bias
            ],
            out_specs=pl.BlockSpec((row_tile, hf_pad), lambda i: (i, 0)),    # lane-dense out
            scratch_shapes=[pltpu.VMEM((row_tile, n_pad), jnp.float32)]),    # additive bias
        compiler_params=cparams,
    )(e_dst, e_src_t, adj_mask, h_heads, b_flat)
    return out, f_pad


def dense_adjacency_mask(edge_index, num_nodes, num_nodes_padded):
    """int8 edge mask: 1 where edge j->i exists (plus self loops on real nodes), else 0.

    Padded rows/columns stay 0, so padded nodes never contribute as attention sources.
    """
    # TODO(synk): duplicate (src, dst) pairs collapse to a single edge; PyG's edge-list
    # softmax counts duplicates separately, so outputs diverge on multigraphs.
    src, dst = edge_index[0], edge_index[1]
    adj = jnp.zeros((num_nodes_padded, num_nodes_padded), jnp.int8)
    adj = adj.at[dst, src].set(jnp.int8(1))                  # adj[target, source] = 1
    idx = jnp.arange(num_nodes)
    adj = adj.at[idx, idx].set(jnp.int8(1))                  # self loops on real nodes
    return adj


def init_gat_params(key, in_channels, class_channels, hidden=8, heads=8):
    """Deterministic glorot-style init matching GATConv parameter shapes."""
    ks = jax.random.split(key, 6)

    def glorot(k, shape, fan_in, fan_out):
        limit = jnp.sqrt(6.0 / (fan_in + fan_out))
        return jax.random.uniform(k, shape, jnp.float32, -limit, limit)

    p = {}
    # conv1: GATConv(in_channels, 8, heads=8)
    p["w1"] = glorot(ks[0], (heads, in_channels, hidden), in_channels, heads * hidden)
    p["asrc1"] = glorot(ks[1], (heads, hidden), hidden, hidden)
    p["adst1"] = glorot(ks[2], (heads, hidden), hidden, hidden)
    p["b1"] = jnp.zeros((heads, hidden), jnp.float32)
    # conv2: GATConv(8*8, class_channels, heads=1, concat=False)
    p["w2"] = glorot(ks[3], (1, heads * hidden, class_channels),
                     heads * hidden, class_channels)
    p["asrc2"] = glorot(ks[4], (1, class_channels), class_channels, class_channels)
    p["adst2"] = glorot(ks[5], (1, class_channels), class_channels, class_channels)
    p["b2"] = jnp.zeros((1, class_channels), jnp.float32)
    return p


def gat_forward(params, x, edge_index):
    """Forward pass of GAT (inference mode: dropout layers are identity)."""
    n = x.shape[0]
    max_tile, vmem_limit = _device_config()
    row_tile, n_pad = _choose_row_tile(n, max_tile, vmem_limit)

    adj_mask = dense_adjacency_mask(edge_index, n, n_pad)    # int8 [Np, Np]
    x_pad = jnp.pad(x, ((0, n_pad - n), (0, 0)))

    heads1, hidden1 = params["w1"].shape[0], params["w1"].shape[2]

    # x = F.dropout(x, 0.5, training=False) -> identity
    # x = F.elu(conv1(x, edge_index)); 8 heads of width 8 concatenated
    h1, f_pad1 = gat_conv(x_pad, adj_mask, params["w1"], params["asrc1"],
                          params["adst1"], params["b1"], activation="elu",
                          out_dtype=jnp.bfloat16,            # bf16 inter-layer activation
                          row_tile=row_tile, vmem_limit=vmem_limit)
    # drop per-head lane padding so conv2 sees the PyG [N, heads*hidden] layout
    h1 = h1.reshape(n_pad, heads1, f_pad1)[:, :, :hidden1].reshape(n_pad, heads1 * hidden1)

    # x = F.dropout(x, 0.5, training=False) -> identity
    # x = conv2(x, edge_index); heads=1, concat=False; then sigmoid
    h2, _ = gat_conv(h1, adj_mask, params["w2"], params["asrc2"],
                     params["adst2"], params["b2"], activation="sigmoid",
                     out_dtype=jnp.float32,
                     row_tile=row_tile, vmem_limit=vmem_limit)
    n_classes = params["w2"].shape[2]
    return h2[:n, :n_classes]


if __name__ == "__main__":
    key = jax.random.PRNGKey(0)
    k_x, k_src, k_dst, k_param = jax.random.split(key, 4)

    N, IN_CH, CLASS_CH, E = 16, 8, 4, 40

    x = jax.random.normal(k_x, (N, IN_CH), jnp.float32)
    src = jax.random.randint(k_src, (E,), 0, N)
    dst = jax.random.randint(k_dst, (E,), 0, N)
    edge_index = jnp.stack([src, dst], axis=0)               # [2, E]

    params = init_gat_params(k_param, IN_CH, CLASS_CH, hidden=8, heads=8)

    out = gat_forward(params, x, edge_index)                 # [N, CLASS_CH]
    out = jax.block_until_ready(out)

    assert out.shape == (N, CLASS_CH)
    assert bool(jnp.all(jnp.isfinite(out)))
    assert bool(jnp.all((out >= 0.0) & (out <= 1.0)))        # sigmoid range
    print("KERNEL_OK")
</pallas_src>

<mosaic_0001>
module attributes {stable_mosaic.version = 11 : i64} {
  func.func @_project_kernel(%arg0: i32, %arg1: memref<16x8xbf16, #tpu.memory_space<vmem>>, %arg2: memref<8x256xbf16, #tpu.memory_space<vmem>>, %arg3: memref<16x128xbf16, #tpu.memory_space<vmem>>, %arg4: memref<16x128xf32, #tpu.memory_space<vmem>>) attributes {dimension_semantics = [#tpu.dimension_semantics<parallel>], iteration_bounds = array<i64: 1>, scalar_prefetch = 0 : i64, scratch_operands = 0 : i64, tpu.core_type = #tpu.core_type<tc>, window_params = [{transform_indices = @transform_0, window_bounds = array<i64: 16, 8>}, {pipeline_mode = #tpu.pipeline_mode<synchronous>, transform_indices = @transform_1, window_bounds = array<i64: 8, 256>}, {transform_indices = @transform_2, window_bounds = array<i64: 16, 128>}, {transform_indices = @transform_3, window_bounds = array<i64: 16, 128>}]} {
    %c0 = arith.constant 0 : index
    %c0_0 = arith.constant 0 : index
    %0 = vector.load %arg1[%c0, %c0_0] : memref<16x8xbf16, #tpu.memory_space<vmem>>, vector<16x8xbf16>
    %c0_1 = arith.constant 0 : index
    %c0_2 = arith.constant 0 : index
    %1 = vector.load %arg2[%c0_1, %c0_2] : memref<8x256xbf16, #tpu.memory_space<vmem>>, vector<8x256xbf16>
    %cst = arith.constant dense<0.000000e+00> : vector<16x256xf32>
    %2 = tpu.matmul %0, %1, %cst {dimension_numbers = #tpu.dot_dimension_numbers<[1], [0], [0], [1], [0, 0, 1, 1], [], []>} : vector<16x8xbf16>, vector<8x256xbf16>, vector<16x256xf32> -> vector<16x256xf32>
    %3 = vector.extract_strided_slice %2 {offsets = [0, 0], sizes = [16, 128], strides = [1, 1]} : vector<16x256xf32> to vector<16x128xf32>
    %4 = arith.truncf %3 : vector<16x128xf32> to vector<16x128xbf16>
    %c0_3 = arith.constant 0 : index
    %c0_4 = arith.constant 0 : index
    %5 = vector.load %arg3[%c0_3, %c0_4] : memref<16x128xbf16, #tpu.memory_space<vmem>>, vector<16x128xbf16>
    tpu.vector_store %arg3[%c0_3, %c0_4], %4 {strides = array<i32>} : memref<16x128xbf16, #tpu.memory_space<vmem>>, vector<16x128xbf16>,
    %6 = vector.extract_strided_slice %2 {offsets = [0, 128], sizes = [16, 128], strides = [1, 1]} : vector<16x256xf32> to vector<16x128xf32>
    %c0_5 = arith.constant 0 : index
    %c0_6 = arith.constant 0 : index
    %7 = vector.load %arg4[%c0_5, %c0_6] : memref<16x128xf32, #tpu.memory_space<vmem>>, vector<16x128xf32>
    tpu.vector_store %arg4[%c0_5, %c0_6], %6 {strides = array<i32>} : memref<16x128xf32, #tpu.memory_space<vmem>>, vector<16x128xf32>,
    return
  }
  func.func @transform_0(%arg0: i32) -> (i32, i32) {
    %c0_i32 = arith.constant 0 : i32
    %c0_i32_0 = arith.constant 0 : i32
    return %arg0, %c0_i32 : i32, i32
  }
  func.func @transform_1(%arg0: i32) -> (i32, i32) {
    %c0_i32 = arith.constant 0 : i32
    %c0_i32_0 = arith.constant 0 : i32
    %c0_i32_1 = arith.constant 0 : i32
    return %c0_i32, %c0_i32_0 : i32, i32
  }
  func.func @transform_2(%arg0: i32) -> (i32, i32) {
    %c0_i32 = arith.constant 0 : i32
    %c0_i32_0 = arith.constant 0 : i32
    return %arg0, %c0_i32 : i32, i32
  }
  func.func @transform_3(%arg0: i32) -> (i32, i32) {
    %c0_i32 = arith.constant 0 : i32
    %c0_i32_0 = arith.constant 0 : i32
    return %arg0, %c0_i32 : i32, i32
  }
}

</mosaic_0001>

<bundles_post_ra>
// kernel: tpu_custom_call.1
= control target key start
LH: loop header
LB: loop body
LE: loop exit
PB: predicated region body
PF: predicated region fallthrough
CT: control target
= control target key end

     0   :  { %9 = vsyncpa [#allocation3], 0  ;;  %vm33_vm0 = vcmask 1043456   ;;  %v199_v3 = vmov 0   ;;  %s263_s0 = inlined_call_operand.vmem [shape: bf16[16,8], index: 0, kind: input, shape index: {}]   ;;  %s264_s1 = inlined_call_operand.vmem [shape: bf16[8,256], index: 1, kind: input, shape index: {}]   ;;  %s265_s2 = inlined_call_operand.hbm [shape: bf16[16,128], index: 2, kind: output, shape index: {0}]   ;;  %s266_s3 = inlined_call_operand.hbm [shape: f32[16,128], index: 3, kind: output, shape index: {1}]  }
   0x1   :  { %v18_v0 = vld [vmem:[%s264_s1] sm:$0xff]  ;;  %72 = vmatprep.mubr.bf16.mxu0 %v199_v3 }
   0x2   :  { %v129_v1 = vcombine.high %v18_v0, %v18_v0  ;;  %v128_v2 = vcombine.low %v18_v0, %v18_v0 }
   0x3   :  { %10 = vsyncpa [#allocation5], 0  ;;  %v150_v5 = vld [vmem:[%s263_s0] sm:$0xff]   ;;  %vm29_vm1 = vcmask 64512   ;;  %s200_s16 = smov [#allocation2]   ;;  %s201_s18 = smov [#allocation4]  }
   0x4   :  { %130 = vmatprep.subr.msk.bf16.mxu0 %vm33_vm0, %v129_v1  ;;  %v35_v4 = vsel %vm33_vm0, %v128_v2, 0  ;;  %s100_s17 = sshll.u32 %s200_s16, 4  ;;  %s112_s19 = sshll.u32 %s201_s18, 4  ;;  %s232_s17 = int_to_ptr.vmem [resolvable:$true] %s100_s17  ;;  %s113_s19 = int_to_ptr.vmem [resolvable:$true] %s112_s19 }
   0x5   :  { %41 = vmatpush1.bf16.msra.mxu0 %v35_v4  ;;  %s151_s1 = scalar_lea.vmem %s113_s19, 256  ;;  %p156_p1 = scmp.lt.s32.totalorder %s113_s19, %s113_s19 }
   0x6   :  { %p152_p0 = scmp.ne.s32.totalorder %s113_s19, %s151_s1  ;;  %p157_p2 = scmp.lt.s32.totalorder %s151_s1, %s151_s1 }
   0x8   :  { %131 = vmatmul.mubr.msk.bf16.vlgmr.msra.gmra.mrb[0].mxu0 %vm29_vm1, %v150_v5  ;;  %p158_p3 = por %p157_p2, %p156_p1 }
   0xa   :  { %p159_p4 = pnand %p158_p3, %p152_p0 }
  0xdb   :  { %v74_v6 = vpop.f32.mrb[0].mxu0 }
  0xdc   :  { %v76_v7 = vpop.f32.mrb[1].mxu0 }
  0xdd   :  { %93 = vst [vmem:[#allocation4] sm:$0xff] %v76_v7  ;;  %v78_v8 = vpop.f32.mrb[2].mxu0 }
  0xde   :  { %v139_v9 = vpack.c.bf16 %v78_v8, %v74_v6  ;;  %v80_v10 = vpop.f32.mrb[3].mxu0 }
  0xdf   :  { %94 = vst [vmem:[#allocation4 + $0x8] sm:$0xff] %v80_v10 }
  0xe0   :  { %140 = vst [vmem:[#allocation2] sm:$0xff] %v139_v9  }
  0xe1   :  { %162 = shalt.err (!%p159_p4)
}
  0xe2   :  { %s163_s21 = scalar_lea.hbm %s266_s3, 256 }
  0xe3   :  { %p164_p5 = scmp.ne.s32.totalorder %s266_s3, %s163_s21  ;;  %p167_p6 = scmp.lt.u32.totalorder %s163_s21, %s266_s3 }
  0xe5   :  { %p169_p7 = pnand %p167_p6, %p164_p5 }
  0xe7   :  { %172 = shalt.err (!%p169_p7)
}
  0xe8   :  { %s202_s26 = smov 128   ;;  %s203_s27 = smov 8  }
  0xe9   :  { %118 = dma.vmem_to_hbm [thread:$0]  %s113_s19, 256, %s266_s3, [#allocation5], %s202_s26, %s202_s26, %s203_s27  }
  0xea   :  { %s173_s30 = scalar_lea.vmem %s232_s17, 128  ;;  %p178_p9 = scmp.lt.s32.totalorder %s232_s17, %s232_s17 }
  0xeb   :  { %p174_p8 = scmp.ne.s32.totalorder %s232_s17, %s173_s30  ;;  %p179_p10 = scmp.lt.s32.totalorder %s173_s30, %s173_s30 }
  0xed   :  { %p180_p11 = por %p179_p10, %p178_p9 }
  0xef   :  { %p181_p12 = pnand %p180_p11, %p174_p8 }
  0xf1   :  { %184 = shalt.err (!%p181_p12)
}
  0xf2   :  { %s185_s6 = scalar_lea.hbm %s265_s2, 128 }
  0xf3   :  { %p186_p13 = scmp.ne.s32.totalorder %s265_s2, %s185_s6  ;;  %p189_p0 = scmp.lt.u32.totalorder %s185_s6, %s265_s2 }
  0xf5   :  { %p191_p1 = pnand %p189_p0, %p186_p13 }
  0xf7   :  { %194 = shalt.err (!%p191_p1)
}
  0xf8   :  { %s204_s3 = smov 64   ;;  %s205_s11 = smov 4  }
  0xf9   :  { %106 = dma.vmem_to_hbm [thread:$0]  %s232_s17, 128, %s265_s2, [#allocation3], %s204_s3, %s204_s3, %s205_s11  }
  0xfa   :  { %195 = dma.done.wait [#allocation3], 128  }
  0xfb   :  { %196 = vsyncadd [#allocation3], 4294967168 }
  0xfc   :  { %197 = dma.done.wait [#allocation5], 256  }
  0xfd   :  { %198 = vsyncadd [#allocation5], 4294967040 }
  0xfe   :  { %125 = vsyncpa [#allocation3], 1 }
  0xff   :  { %126 = vsyncpa [#allocation5], 1 }

</bundles_post_ra>
